<compile_context>
chip_gen: v6e
topology: v6e:2x2x1
jax: 0.10.0
libtpu: 0.0.40
codegen_flags: <defaults>
</compile_context>

<pallas_src>
import functools

import jax
import jax.numpy as jnp
from jax import lax
from jax.experimental import pallas as pl
from jax.experimental.pallas import tpu as pltpu


def _layernorm_kernel(*refs, eps, use_mean, elementwise_scale,
                      elementwise_shift):
    # refs = (x_ref, [w_ref], [b_ref], o_ref)
    idx = 0
    x_ref = refs[idx]; idx += 1
    w_ref = None
    b_ref = None
    if elementwise_scale:
        w_ref = refs[idx]; idx += 1
    if elementwise_shift:
        b_ref = refs[idx]; idx += 1
    o_ref = refs[idx]

    # Reduction path always in fp32: the upcast is VPU work (huge slack in a
    # mem-bound kernel) and rsqrt goes to the EUP slot, so it is wall-clock
    # free. Identical to the reference for fp32 inputs; >= precision of the
    # use_high_precision_pow=True path for bf16 inputs.
    xf = x_ref[...].astype(jnp.float32)                  # (tm, D)
    if use_mean:
        xf = xf - jnp.mean(xf, axis=-1, keepdims=True)

    ms = jnp.mean(xf * xf, axis=-1, keepdims=True)       # mean of squares
    xf = xf * lax.rsqrt(ms + eps)
    y = xf.astype(x_ref.dtype)                           # .type_as(x)

    if elementwise_scale:
        y = w_ref[...] * y                               # (1, D) broadcast over rows
    if elementwise_shift:
        y = y + b_ref[...]

    o_ref[...] = y.astype(o_ref.dtype)


def _sublane_multiple(dtype):
    itemsize = jnp.dtype(dtype).itemsize
    if itemsize >= 4:
        return 8
    if itemsize == 2:
        return 16
    return 32


def _vmem_budget_bytes():
    """~75% of physical VMEM (128 MiB on v5e/v6e -> 96 MiB; 64 MiB on v7x -> 48 MiB)."""
    cap = None
    try:
        info = pltpu.get_tpu_info()
        cap = getattr(info, "vmem_capacity_bytes", None)
    except Exception:
        cap = None
    if not cap:
        try:
            kind = jax.devices()[0].device_kind.lower()
            cap = 64 * 1024 * 1024 if "7" in kind else 128 * 1024 * 1024
        except Exception:
            cap = 128 * 1024 * 1024
    return int(cap) * 3 // 4


def _row_tile(rows, D, dtype, vmem_budget):
    """Largest row tile that keeps all resident buffers under the VMEM budget."""
    itemsize = jnp.dtype(dtype).itemsize
    sub = _sublane_multiple(dtype)
    # Resident bytes per tile-row:
    #   2x input  (double-buffered) : 2 * D * itemsize
    #   2x output (double-buffered) : 2 * D * itemsize
    #   ~2x fp32 intermediates      : 2 * D * 4
    per_row = 4 * D * itemsize + 2 * D * 4
    tm = (vmem_budget * 4 // 5) // max(per_row, 1)
    tm = min(tm, 1024)          # past ~512 rows the HBM roofline is saturated
    tm = max(tm, sub)
    rows_rounded = ((rows + sub - 1) // sub) * sub
    tm = min(tm, rows_rounded)  # don't exceed the (sublane-rounded) problem size
    tm = max((tm // sub) * sub, sub)
    return tm
    # TODO(synk): for extreme hidden sizes where even a sub-row tile exceeds
    # the budget (e.g. D >= 64K fp32 on v7x), a two-pass D-blocked reduction
    # would be needed; this single-pass full-D tile simply shrinks tm instead.


def layernorm_parameterized(x, weight=None, bias=None, *, eps=1e-6,
                            elementwise_scale=True, elementwise_shift=False,
                            use_mean=False, use_high_precision_pow=False,
                            row_tile=None):
    """Pallas implementation of LayerNormParameterized.forward.

    x: (..., D). weight/bias: (D,) if the corresponding flag is set.
    row_tile: optional override for rows per block (default: VMEM-derived).
    """
    del use_high_precision_pow  # reduction always runs in fp32 (see kernel note)

    orig_shape = x.shape
    D = orig_shape[-1]
    rows = 1
    for s in orig_shape[:-1]:
        rows *= s
    x2 = x.reshape(rows, D)

    vmem_budget = _vmem_budget_bytes()
    if row_tile is None:
        tm = _row_tile(rows, D, x.dtype, vmem_budget)
    else:
        sub = _sublane_multiple(x.dtype)
        tm = max((int(row_tile) // sub) * sub, sub)

    grid = (pl.cdiv(rows, tm),)  # partial last block is clipped by Pallas

    in_arrays = [x2]
    in_specs = [pl.BlockSpec((tm, D), lambda i: (i, 0))]
    if elementwise_scale:
        assert weight is not None and weight.shape == (D,)
        in_arrays.append(weight.reshape(1, D).astype(x.dtype))
        in_specs.append(pl.BlockSpec((1, D), lambda i: (0, 0)))
    if elementwise_shift:
        assert bias is not None and bias.shape == (D,)
        in_arrays.append(bias.reshape(1, D).astype(x.dtype))
        in_specs.append(pl.BlockSpec((1, D), lambda i: (0, 0)))

    kernel = functools.partial(
        _layernorm_kernel,
        eps=float(eps),
        use_mean=use_mean,
        elementwise_scale=elementwise_scale,
        elementwise_shift=elementwise_shift,
    )

    out = pl.pallas_call(
        kernel,
        out_shape=jax.ShapeDtypeStruct((rows, D), x.dtype),
        grid_spec=pltpu.PrefetchScalarGridSpec(
            num_scalar_prefetch=0,
            grid=grid,
            in_specs=in_specs,
            out_specs=pl.BlockSpec((tm, D), lambda i: (i, 0)),
        ),
        compiler_params=pltpu.CompilerParams(
            dimension_semantics=("parallel",),
            vmem_limit_bytes=vmem_budget,
        ),
    )(*in_arrays)

    return out.reshape(orig_shape)


def _reference(x, weight, bias, *, eps, elementwise_scale, elementwise_shift,
               use_mean, use_high_precision_pow):
    if use_mean:
        x = x - jnp.mean(x, axis=-1, keepdims=True)
    xf = x.astype(jnp.float32) if use_high_precision_pow else x
    xf = xf * lax.rsqrt(jnp.mean(xf * xf, axis=-1, keepdims=True) + eps)
    x = xf.astype(x.dtype)
    if elementwise_scale:
        x = weight * x
    if elementwise_shift:
        x = x + bias
    return x


if __name__ == "__main__":
    key = jax.random.PRNGKey(0)
    kx, kw, kb, kx2 = jax.random.split(key, 4)

    # --- Config 1: module defaults (RMSNorm + learned scale), small shapes ---
    batch, seq, hidden = 2, 8, 32
    x = jax.random.normal(kx, (batch, seq, hidden), dtype=jnp.float32)
    weight = 1.0 + 0.1 * jax.random.normal(kw, (hidden,), dtype=jnp.float32)

    cfg1 = dict(eps=1e-6, elementwise_scale=True, elementwise_shift=False,
                use_mean=False, use_high_precision_pow=False)
    out1 = jax.block_until_ready(layernorm_parameterized(x, weight, None, **cfg1))
    ref1 = _reference(x, weight, None, **cfg1)
    assert out1.shape == x.shape and out1.dtype == x.dtype
    assert jnp.allclose(out1, ref1, atol=1e-5, rtol=1e-5), "mismatch (config 1)"

    # --- Config 2: full LayerNorm (mean + scale + shift), row count that is
    # not a multiple of the tile, exercising the clipped partial block. ---
    rows2, hidden2 = 15, 128
    x2 = jax.random.normal(kx2, (rows2, hidden2), dtype=jnp.float32)
    w2 = 1.0 + 0.05 * jax.random.normal(kw, (hidden2,), dtype=jnp.float32)
    b2 = 0.02 * jax.random.normal(kb, (hidden2,), dtype=jnp.float32)

    cfg2 = dict(eps=1e-6, elementwise_scale=True, elementwise_shift=True,
                use_mean=True, use_high_precision_pow=True)
    out2 = jax.block_until_ready(layernorm_parameterized(x2, w2, b2, **cfg2))
    ref2 = _reference(x2, w2, b2, **cfg2)
    assert out2.shape == x2.shape and out2.dtype == x2.dtype
    assert jnp.allclose(out2, ref2, atol=1e-5, rtol=1e-5), "mismatch (config 2)"

    print("KERNEL_OK")
</pallas_src>

<mosaic_0001>
module attributes {stable_mosaic.version = 11 : i64} {
  func.func @_layernorm_kernel(%arg0: i32, %arg1: memref<16x32xf32, #tpu.memory_space<vmem>>, %arg2: memref<1x32xf32, #tpu.memory_space<vmem>>, %arg3: memref<16x32xf32, #tpu.memory_space<vmem>>) attributes {dimension_semantics = [#tpu.dimension_semantics<parallel>], iteration_bounds = array<i64: 1>, scalar_prefetch = 0 : i64, scratch_operands = 0 : i64, tpu.core_type = #tpu.core_type<tc>, window_params = [{transform_indices = @transform_0, window_bounds = array<i64: 16, 32>}, {pipeline_mode = #tpu.pipeline_mode<synchronous>, transform_indices = @transform_1, window_bounds = array<i64: 1, 32>}, {transform_indices = @transform_2, window_bounds = array<i64: 16, 32>}]} {
    %c0 = arith.constant 0 : index
    %c0_0 = arith.constant 0 : index
    %0 = vector.load %arg1[%c0, %c0_0] : memref<16x32xf32, #tpu.memory_space<vmem>>, vector<16x32xf32>
    %1 = arith.mulf %0, %0 : vector<16x32xf32>
    %cst = arith.constant dense<0.000000e+00> : vector<16xf32>
    %2 = vector.multi_reduction <add>, %1, %cst [1] : vector<16x32xf32> to vector<16xf32>
    %3 = vector.shape_cast %2 : vector<16xf32> to vector<16x1xf32>
    %cst_1 = arith.constant 3.200000e+01 : f32
    %4 = vector.broadcast %cst_1 : f32 to vector<16x1xf32>
    %5 = arith.divf %3, %4 : vector<16x1xf32>
    %cst_2 = arith.constant 9.99999997E-7 : f32
    %6 = vector.broadcast %cst_2 : f32 to vector<16x1xf32>
    %7 = arith.addf %5, %6 : vector<16x1xf32>
    %8 = math.rsqrt %7 : vector<16x1xf32>
    %9 = vector.broadcast %8 : vector<16x1xf32> to vector<16x32xf32>
    %10 = arith.mulf %0, %9 : vector<16x32xf32>
    %c0_3 = arith.constant 0 : index
    %c0_4 = arith.constant 0 : index
    %11 = vector.load %arg2[%c0_3, %c0_4] : memref<1x32xf32, #tpu.memory_space<vmem>>, vector<1x32xf32>
    %12 = vector.broadcast %11 : vector<1x32xf32> to vector<16x32xf32>
    %13 = arith.mulf %12, %10 : vector<16x32xf32>
    %c0_5 = arith.constant 0 : index
    %c0_6 = arith.constant 0 : index
    %14 = vector.load %arg3[%c0_5, %c0_6] : memref<16x32xf32, #tpu.memory_space<vmem>>, vector<16x32xf32>
    tpu.vector_store %arg3[%c0_5, %c0_6], %13 {strides = array<i32>} : memref<16x32xf32, #tpu.memory_space<vmem>>, vector<16x32xf32>,
    return
  }
  func.func @transform_0(%arg0: i32) -> (i32, i32) {
    %c0_i32 = arith.constant 0 : i32
    %c0_i32_0 = arith.constant 0 : i32
    return %arg0, %c0_i32 : i32, i32
  }
  func.func @transform_1(%arg0: i32) -> (i32, i32) {
    %c0_i32 = arith.constant 0 : i32
    %c0_i32_0 = arith.constant 0 : i32
    %c0_i32_1 = arith.constant 0 : i32
    return %c0_i32, %c0_i32_0 : i32, i32
  }
  func.func @transform_2(%arg0: i32) -> (i32, i32) {
    %c0_i32 = arith.constant 0 : i32
    %c0_i32_0 = arith.constant 0 : i32
    return %arg0, %c0_i32 : i32, i32
  }
}

</mosaic_0001>

<bundles_post_ra>
// kernel: tpu_custom_call.1
= control target key start
LH: loop header
LB: loop body
LE: loop exit
PB: predicated region body
PF: predicated region fallthrough
CT: control target
= control target key end

     0   :  { %7 = vsyncpa [#allocation3], 0  ;;  %s165_s0 = inlined_call_operand.hbm [shape: f32[16,32], index: 0, kind: input, shape index: {}]   ;;  %s166_s1 = inlined_call_operand.vmem [shape: f32[1,32], index: 1, kind: input, shape index: {}]   ;;  %s167_s2 = inlined_call_operand.hbm [shape: f32[16,32], index: 2, kind: output, shape index: {}]  }
   0x1   :  { %8 = vsyncpa [#allocation4], 0  ;;  %s127_s9 = smov [#allocation2]  }
   0x2   :  { %s14_s10 = sshll.u32 %s127_s9, 4  ;;  %s15_s10 = int_to_ptr.vmem [resolvable:$true] %s14_s10 }
   0x3   :  { %s91_s11 = scalar_lea.vmem %s15_s10, 256  ;;  %p96_p1 = scmp.lt.s32.totalorder %s15_s10, %s15_s10 }
   0x4   :  { %p92_p0 = scmp.ne.s32.totalorder %s15_s10, %s91_s11  ;;  %p97_p2 = scmp.lt.s32.totalorder %s91_s11, %s91_s11 }
   0x6   :  { %p98_p3 = por %p97_p2, %p96_p1 }
   0x8   :  { %p99_p4 = pnand %p98_p3, %p92_p0 }
   0xa   :  { %102 = shalt.err (!%p99_p4)
}
   0xb   :  { %s128_s12 = smov 128   ;;  %s129_s13 = smov 8  }
   0xc   :  { %20 = dma.hbm_to_vmem [thread:$0]  %s165_s0, 256, %s15_s10, [#allocation3], %s128_s12, %s128_s12, %s129_s13  }
   0xd   :  { %123 = dma.done.wait [#allocation3], 256  }
   0xe   :  { %124 = vsyncadd [#allocation3], 4294967040  ;;  %v26_v0 = vld [vmem:[#allocation2] sm:$0xff]  ;;  %vm30_vm0 = vcmask 261120   ;;  %v27_v1 = vld [vmem:[#allocation2 + $0x8] sm:$0xff]  ;;  %s130_s17 = smov [#allocation5]  }
   0xf   :  { %v28_v2 = vmul.f32 %v26_v0, %v26_v0  ;;  %v29_v3 = vmul.f32 %v27_v1, %v27_v1  ;;  %v74_v13 = vld [vmem:[%s166_s1] ss:$0 sm:$0xff]  ;;  %s62_s18 = sshll.u32 %s130_s17, 4  ;;  %s63_s18 = int_to_ptr.vmem [resolvable:$true] %s62_s18 }
  0x10   :  { %s103_s19 = scalar_lea.vmem %s63_s18, 256  ;;  %p108_p6 = scmp.lt.s32.totalorder %s63_s18, %s63_s18 }
  0x11   :  { %v31_v4 = vsel %vm30_vm0, %v28_v2, 0.0  ;;  %v34_v5 = vsel %vm30_vm0, %v29_v3, 0.0  ;;  %p104_p5 = scmp.ne.s32.totalorder %s63_s18, %s103_s19  ;;  %p109_p7 = scmp.lt.s32.totalorder %s103_s19, %s103_s19 }
  0x12   :  { %32 = vadd.xlane.f32.xlu0 %v31_v4 }
  0x13   :  { %p110_p8 = por %p109_p7, %p108_p6 }
  0x15   :  { %p111_p9 = pnand %p110_p8, %p104_p5 }
  0x16   :  { %35 = vadd.xlane.f32.xlu0 %v34_v5 }
  0x9b   :  { %v33_v6 = vpop.xlane.xlu0 %32 }
  0x9c   :  { %v38_v7 = vmul.f32 0.03125, %v33_v6 }
  0x9e   :  { %v40_v8 = vadd.f32 1e-06, %v38_v7 }
  0x9f   :  { %v36_v9 = vpop.xlane.xlu0 %35 }
  0xa0   :  { %79 = vrsqrt.f32 %v40_v8  ;;  %v39_v10 = vmul.f32 0.03125, %v36_v9 }
  0xa2   :  { %v41_v11 = vadd.f32 1e-06, %v39_v10 }
  0xa4   :  { %81 = vrsqrt.f32 %v41_v11 }
  0xad   :  { %v80_v12 = vpop.eup %79 }
  0xae   :  { %v44_v14 = vmul.f32 %v80_v12, %v26_v0 }
  0xb0   :  { %v53_v15 = vmul.f32 %v74_v13, %v44_v14 }
  0xb1   :  { %v82_v16 = vpop.eup %81 }
  0xb2   :  { %v45_v17 = vmul.f32 %v82_v16, %v27_v1  ;;  %55 = vst.msk [vmem:[#allocation5] sm:$0xff] %vm30_vm0, %v53_v15 }
  0xb4   :  { %v54_v18 = vmul.f32 %v74_v13, %v45_v17 }
  0xb6   :  { %56 = vst.msk [vmem:[#allocation5 + $0x8] sm:$0xff] %vm30_vm0, %v54_v18 }
  0xb7   :  { %114 = shalt.err (!%p111_p9)
}
  0xb8   :  { %68 = dma.vmem_to_hbm [thread:$0]  %s63_s18, 256, %s167_s2, [#allocation4], %s128_s12, %s128_s12, %s129_s13  }
  0xb9   :  { %125 = dma.done.wait [#allocation4], 256  }
  0xba   :  { %126 = vsyncadd [#allocation4], 4294967040 }
  0xbb   :  { %72 = vsyncpa [#allocation3], 1 }
  0xbc   :  { %73 = vsyncpa [#allocation4], 1 }

</bundles_post_ra>
